<compile_context>
chip_gen: v6e
topology: v6e:2x2x1
jax: 0.10.0
libtpu: 0.0.40
codegen_flags: <defaults>
</compile_context>

<pallas_src>
import jax
import jax.numpy as jnp
from jax import lax
from jax.experimental import pallas as pl
from jax.experimental.pallas import tpu as pltpu

# Problem sizes (match the PyTorch module: Conv2d(2, 2, 3))
C_IN = 2
C_OUT = 2
K = 3


def _make_conv_kernel(H, W, B):
    """Kernel factory for a (B*C_IN, H*W) -> (B*C_OUT, H*W) flattened conv."""
    HW = H * W
    NROWS = B * C_OUT  # output sublane rows, ordered (b, co) row-major

    def conv2d_kernel(x_ref, w_ref, b_ref, o_ref):
        # x_ref: (B*C_IN,  HW)          VMEM  rows ordered (b, ci) row-major
        # w_ref: (C_OUT*C_IN*K*K,)      SMEM  flattened PyTorch OIHW weights
        # b_ref: (C_OUT,)               SMEM
        # o_ref: (B*C_OUT, HW)          VMEM  rows ordered (b, co) row-major
        x = x_ref[...]  # single full-width load

        # Hoisted row-parity selector: output row r = b*C_OUT + co -> co = r%2.
        row_id = lax.broadcasted_iota(jnp.int32, (NROWS, 1), 0)
        is_co0 = (row_id % C_OUT) == 0

        # Duplicate each input-channel plane onto both output-channel rows so
        # the MAC below runs at full (B*C_OUT, HW) width with no per-row
        # slicing:  dup[ci] rows = [x(b0,ci), x(b0,ci), x(b1,ci), x(b1,ci)].
        rows = [x[r:r + 1, :] for r in range(B * C_IN)]
        dup = []
        for ci in range(C_IN):
            parts = []
            for b in range(B):
                parts.extend([rows[b * C_IN + ci]] * C_OUT)
            dup.append(jnp.concatenate(parts, axis=0))  # (B*C_OUT, HW)

        def wcol(ci, t):
            # (NROWS, 1) weight column: row (b*C_OUT + co) -> weight[co, ci, t]
            w0 = w_ref[(0 * C_IN + ci) * (K * K) + t]
            w1 = w_ref[(1 * C_IN + ci) * (K * K) + t]
            return jnp.where(is_co0, w0, w1)

        # 18 weighted taps, all full-width (B*C_OUT, HW) VPU products; taps are
        # generated with XLU lane rolls. Roll shift (HW - s) brings flattened
        # element p + s (= pixel (i+kh, j+kw)) to position p (= pixel (i, j));
        # wrap-around lanes are cropped away by the wrapper.
        prods = []
        for ci in range(C_IN):
            d = dup[ci]
            for kh in range(K):
                for kw in range(K):
                    t = kh * K + kw
                    s = kh * W + kw
                    tap = d if s == 0 else pltpu.roll(d, (HW - s) % HW, axis=1)
                    prods.append(wcol(ci, t) * tap)

        # Balanced tree reduction -> short dependency chains, VALU co-issue.
        while len(prods) > 1:
            nxt = [prods[i] + prods[i + 1] for i in range(0, len(prods) - 1, 2)]
            if len(prods) % 2:
                nxt.append(prods[-1])
            prods = nxt

        bias_col = jnp.where(is_co0, b_ref[0], b_ref[1])  # (NROWS, 1)

        # Single full-width (lane-dense, unmasked) store; no concat.
        o_ref[...] = (prods[0] + bias_col).astype(o_ref.dtype)

    return conv2d_kernel


def conv2d_pallas(x, weight, bias):
    """x: (B, C_IN, H, W) f32; weight: (C_OUT, C_IN, K, K); bias: (C_OUT,)."""
    B, Cin, H, W = x.shape
    assert Cin == C_IN
    HW = H * W
    # Lane-density invariant: without this, output stores become masked
    # (known ~4.5x store penalty) with no warning.
    assert HW % 128 == 0, "H*W must be a multiple of 128 for lane-dense stores"
    H_out, W_out = H - (K - 1), W - (K - 1)

    # FREE reshapes (no transpose/copy): (B, C_IN, H, W) -> (B*C_IN, H*W).
    x_flat = x.reshape(B * C_IN, HW).astype(jnp.float32)
    w_flat = weight.reshape(-1).astype(jnp.float32)
    b = bias.astype(jnp.float32)

    out_flat = pl.pallas_call(
        _make_conv_kernel(H, W, B),
        out_shape=jax.ShapeDtypeStruct((B * C_OUT, HW), jnp.float32),
        grid_spec=pltpu.PrefetchScalarGridSpec(
            num_scalar_prefetch=0,
            grid=(1,),  # whole problem in a single grid step (one DMA in/out)
            in_specs=[
                pl.BlockSpec((B * C_IN, HW), lambda i: (0, 0)),
                pl.BlockSpec(memory_space=pltpu.SMEM),
                pl.BlockSpec(memory_space=pltpu.SMEM),
            ],
            out_specs=pl.BlockSpec((B * C_OUT, HW), lambda i: (0, 0)),
        ),
        compiler_params=pltpu.CompilerParams(
            dimension_semantics=("arbitrary",)),
    )(x_flat, w_flat, b)

    # Free reshape back to NCHW, then crop to the valid convolution window.
    # NOTE: the crop is load-bearing -- roll-generated taps wrap within each
    # (b, ci) plane, so lanes at i >= H_out or j >= W_out contain garbage and
    # must never be consumed downstream.
    out = out_flat.reshape(B, C_OUT, H, W)
    return out[:, :, :H_out, :W_out]


def reference_conv(x, weight, bias):
    out = lax.conv_general_dilated(
        x, weight, window_strides=(1, 1), padding="VALID",
        dimension_numbers=("NCHW", "OIHW", "NCHW"))
    return out + bias.reshape(1, -1, 1, 1)


if __name__ == "__main__":
    key = jax.random.PRNGKey(0)
    kx, kw, kb = jax.random.split(key, 3)

    # Deterministic "parameters" (synthetic, not loaded from a checkpoint).
    B, H, W = 2, 16, 16
    x = jax.random.normal(kx, (B, C_IN, H, W), dtype=jnp.float32)
    weight = jax.random.normal(kw, (C_OUT, C_IN, K, K), dtype=jnp.float32) * 0.1
    bias = jax.random.normal(kb, (C_OUT,), dtype=jnp.float32) * 0.1

    out = conv2d_pallas(x, weight, bias)
    out = jax.block_until_ready(out)

    ref = reference_conv(x, weight, bias)
    assert out.shape == (B, C_OUT, H - 2, W - 2), out.shape
    assert jnp.allclose(out, ref, atol=1e-4, rtol=1e-4), \
        float(jnp.max(jnp.abs(out - ref)))

    print("KERNEL_OK")
</pallas_src>

<mosaic_0001>
module attributes {stable_mosaic.version = 11 : i64} {
  func.func @conv2d_kernel(%arg0: i32, %arg1: memref<4x256xf32, #tpu.memory_space<vmem>>, %arg2: memref<36xf32, #tpu.memory_space<smem>>, %arg3: memref<2xf32, #tpu.memory_space<smem>>, %arg4: memref<4x256xf32, #tpu.memory_space<vmem>>) attributes {dimension_semantics = [#tpu.dimension_semantics<arbitrary>], iteration_bounds = array<i64: 1>, scalar_prefetch = 0 : i64, scratch_operands = 0 : i64, tpu.core_type = #tpu.core_type<tc>, window_params = [{pipeline_mode = #tpu.pipeline_mode<synchronous>, transform_indices = @transform_0, window_bounds = array<i64: 4, 256>}, {transform_indices = @transform_1, window_bounds = array<i64: 36>}, {transform_indices = @transform_2, window_bounds = array<i64: 2>}, {pipeline_mode = #tpu.pipeline_mode<synchronous>, transform_indices = @transform_3, window_bounds = array<i64: 4, 256>}]} {
    %c0 = arith.constant 0 : index
    %c0_0 = arith.constant 0 : index
    %0 = vector.load %arg1[%c0, %c0_0] : memref<4x256xf32, #tpu.memory_space<vmem>>, vector<4x256xf32>
    %1 = tpu.iota {dimensions = array<i32: 0>} : vector<4x1xi32>
    %c2_i32 = arith.constant 2 : i32
    %c0_i32 = arith.constant 0 : i32
    %2 = arith.cmpi eq, %c2_i32, %c0_i32 : i32
    %c1_i32 = arith.constant 1 : i32
    %3 = arith.select %2, %c1_i32, %c2_i32 : i32
    %4 = vector.broadcast %3 : i32 to vector<4x1xi32>
    %5 = arith.remsi %1, %4 : vector<4x1xi32>
    %c0_i32_1 = arith.constant 0 : i32
    %6 = vector.broadcast %c0_i32_1 : i32 to vector<4x1xi32>
    %7 = arith.cmpi ne, %5, %6 : vector<4x1xi32>
    %c0_i32_2 = arith.constant 0 : i32
    %8 = vector.broadcast %c0_i32_2 : i32 to vector<4x1xi32>
    %9 = arith.cmpi slt, %5, %8 : vector<4x1xi32>
    %c0_i32_3 = arith.constant 0 : i32
    %10 = arith.cmpi slt, %3, %c0_i32_3 : i32
    %11 = vector.broadcast %10 : i1 to vector<4x1xi1>
    %12 = vector.broadcast %11 : vector<4x1xi1> to vector<4x1xi1>
    %13 = arith.xori %9, %12 : vector<4x1xi1>
    %14 = arith.andi %13, %7 : vector<4x1xi1>
    %15 = vector.broadcast %3 : i32 to vector<4x1xi32>
    %16 = arith.addi %5, %15 : vector<4x1xi32>
    %17 = arith.select %14, %16, %5 : vector<4x1xi1>, vector<4x1xi32>
    %c0_i32_4 = arith.constant 0 : i32
    %18 = vector.broadcast %c0_i32_4 : i32 to vector<4x1xi32>
    %19 = arith.cmpi eq, %17, %18 : vector<4x1xi32>
    %20 = vector.extract_strided_slice %0 {offsets = [0, 0], sizes = [1, 256], strides = [1, 1]} : vector<4x256xf32> to vector<1x256xf32>
    %21 = vector.extract_strided_slice %0 {offsets = [1, 0], sizes = [1, 256], strides = [1, 1]} : vector<4x256xf32> to vector<1x256xf32>
    %22 = vector.extract_strided_slice %0 {offsets = [2, 0], sizes = [1, 256], strides = [1, 1]} : vector<4x256xf32> to vector<1x256xf32>
    %23 = vector.extract_strided_slice %0 {offsets = [3, 0], sizes = [1, 256], strides = [1, 1]} : vector<4x256xf32> to vector<1x256xf32>
    %24 = tpu.concatenate %20, %20, %22, %22 in 0 : vector<1x256xf32>, vector<1x256xf32>, vector<1x256xf32>, vector<1x256xf32> -> vector<4x256xf32>
    %25 = tpu.concatenate %21, %21, %23, %23 in 0 : vector<1x256xf32>, vector<1x256xf32>, vector<1x256xf32>, vector<1x256xf32> -> vector<4x256xf32>
    %c0_5 = arith.constant 0 : index
    %26 = memref.load %arg2[%c0_5] : memref<36xf32, #tpu.memory_space<smem>>
    %c18 = arith.constant 18 : index
    %27 = memref.load %arg2[%c18] : memref<36xf32, #tpu.memory_space<smem>>
    %28 = vector.broadcast %26 : f32 to vector<4x1xf32>
    %29 = vector.broadcast %27 : f32 to vector<4x1xf32>
    %30 = arith.select %19, %28, %29 : vector<4x1xi1>, vector<4x1xf32>
    %31 = vector.broadcast %30 : vector<4x1xf32> to vector<4x256xf32>
    %32 = arith.mulf %31, %24 : vector<4x256xf32>
    %c255_i32 = arith.constant 255 : i32
    %33 = tpu.dynamic_rotate %24 by %c255_i32 dim 1 : vector<4x256xf32>, i32 -> vector<4x256xf32>
    %c1 = arith.constant 1 : index
    %34 = memref.load %arg2[%c1] : memref<36xf32, #tpu.memory_space<smem>>
    %c19 = arith.constant 19 : index
    %35 = memref.load %arg2[%c19] : memref<36xf32, #tpu.memory_space<smem>>
    %36 = vector.broadcast %34 : f32 to vector<4x1xf32>
    %37 = vector.broadcast %35 : f32 to vector<4x1xf32>
    %38 = arith.select %19, %36, %37 : vector<4x1xi1>, vector<4x1xf32>
    %39 = vector.broadcast %38 : vector<4x1xf32> to vector<4x256xf32>
    %40 = arith.mulf %39, %33 : vector<4x256xf32>
    %c254_i32 = arith.constant 254 : i32
    %41 = tpu.dynamic_rotate %24 by %c254_i32 dim 1 : vector<4x256xf32>, i32 -> vector<4x256xf32>
    %c2 = arith.constant 2 : index
    %42 = memref.load %arg2[%c2] : memref<36xf32, #tpu.memory_space<smem>>
    %c20 = arith.constant 20 : index
    %43 = memref.load %arg2[%c20] : memref<36xf32, #tpu.memory_space<smem>>
    %44 = vector.broadcast %42 : f32 to vector<4x1xf32>
    %45 = vector.broadcast %43 : f32 to vector<4x1xf32>
    %46 = arith.select %19, %44, %45 : vector<4x1xi1>, vector<4x1xf32>
    %47 = vector.broadcast %46 : vector<4x1xf32> to vector<4x256xf32>
    %48 = arith.mulf %47, %41 : vector<4x256xf32>
    %c240_i32 = arith.constant 240 : i32
    %49 = tpu.dynamic_rotate %24 by %c240_i32 dim 1 : vector<4x256xf32>, i32 -> vector<4x256xf32>
    %c3 = arith.constant 3 : index
    %50 = memref.load %arg2[%c3] : memref<36xf32, #tpu.memory_space<smem>>
    %c21 = arith.constant 21 : index
    %51 = memref.load %arg2[%c21] : memref<36xf32, #tpu.memory_space<smem>>
    %52 = vector.broadcast %50 : f32 to vector<4x1xf32>
    %53 = vector.broadcast %51 : f32 to vector<4x1xf32>
    %54 = arith.select %19, %52, %53 : vector<4x1xi1>, vector<4x1xf32>
    %55 = vector.broadcast %54 : vector<4x1xf32> to vector<4x256xf32>
    %56 = arith.mulf %55, %49 : vector<4x256xf32>
    %c239_i32 = arith.constant 239 : i32
    %57 = tpu.dynamic_rotate %24 by %c239_i32 dim 1 : vector<4x256xf32>, i32 -> vector<4x256xf32>
    %c4 = arith.constant 4 : index
    %58 = memref.load %arg2[%c4] : memref<36xf32, #tpu.memory_space<smem>>
    %c22 = arith.constant 22 : index
    %59 = memref.load %arg2[%c22] : memref<36xf32, #tpu.memory_space<smem>>
    %60 = vector.broadcast %58 : f32 to vector<4x1xf32>
    %61 = vector.broadcast %59 : f32 to vector<4x1xf32>
    %62 = arith.select %19, %60, %61 : vector<4x1xi1>, vector<4x1xf32>
    %63 = vector.broadcast %62 : vector<4x1xf32> to vector<4x256xf32>
    %64 = arith.mulf %63, %57 : vector<4x256xf32>
    %c238_i32 = arith.constant 238 : i32
    %65 = tpu.dynamic_rotate %24 by %c238_i32 dim 1 : vector<4x256xf32>, i32 -> vector<4x256xf32>
    %c5 = arith.constant 5 : index
    %66 = memref.load %arg2[%c5] : memref<36xf32, #tpu.memory_space<smem>>
    %c23 = arith.constant 23 : index
    %67 = memref.load %arg2[%c23] : memref<36xf32, #tpu.memory_space<smem>>
    %68 = vector.broadcast %66 : f32 to vector<4x1xf32>
    %69 = vector.broadcast %67 : f32 to vector<4x1xf32>
    %70 = arith.select %19, %68, %69 : vector<4x1xi1>, vector<4x1xf32>
    %71 = vector.broadcast %70 : vector<4x1xf32> to vector<4x256xf32>
    %72 = arith.mulf %71, %65 : vector<4x256xf32>
    %c224_i32 = arith.constant 224 : i32
    %73 = tpu.dynamic_rotate %24 by %c224_i32 dim 1 : vector<4x256xf32>, i32 -> vector<4x256xf32>
    %c6 = arith.constant 6 : index
    %74 = memref.load %arg2[%c6] : memref<36xf32, #tpu.memory_space<smem>>
    %c24 = arith.constant 24 : index
    %75 = memref.load %arg2[%c24] : memref<36xf32, #tpu.memory_space<smem>>
    %76 = vector.broadcast %74 : f32 to vector<4x1xf32>
    %77 = vector.broadcast %75 : f32 to vector<4x1xf32>
    %78 = arith.select %19, %76, %77 : vector<4x1xi1>, vector<4x1xf32>
    %79 = vector.broadcast %78 : vector<4x1xf32> to vector<4x256xf32>
    %80 = arith.mulf %79, %73 : vector<4x256xf32>
    %c223_i32 = arith.constant 223 : i32
    %81 = tpu.dynamic_rotate %24 by %c223_i32 dim 1 : vector<4x256xf32>, i32 -> vector<4x256xf32>
    %c7 = arith.constant 7 : index
    %82 = memref.load %arg2[%c7] : memref<36xf32, #tpu.memory_space<smem>>
    %c25 = arith.constant 25 : index
    %83 = memref.load %arg2[%c25] : memref<36xf32, #tpu.memory_space<smem>>
    %84 = vector.broadcast %82 : f32 to vector<4x1xf32>
    %85 = vector.broadcast %83 : f32 to vector<4x1xf32>
    %86 = arith.select %19, %84, %85 : vector<4x1xi1>, vector<4x1xf32>
    %87 = vector.broadcast %86 : vector<4x1xf32> to vector<4x256xf32>
    %88 = arith.mulf %87, %81 : vector<4x256xf32>
    %c222_i32 = arith.constant 222 : i32
    %89 = tpu.dynamic_rotate %24 by %c222_i32 dim 1 : vector<4x256xf32>, i32 -> vector<4x256xf32>
    %c8 = arith.constant 8 : index
    %90 = memref.load %arg2[%c8] : memref<36xf32, #tpu.memory_space<smem>>
    %c26 = arith.constant 26 : index
    %91 = memref.load %arg2[%c26] : memref<36xf32, #tpu.memory_space<smem>>
    %92 = vector.broadcast %90 : f32 to vector<4x1xf32>
    %93 = vector.broadcast %91 : f32 to vector<4x1xf32>
    %94 = arith.select %19, %92, %93 : vector<4x1xi1>, vector<4x1xf32>
    %95 = vector.broadcast %94 : vector<4x1xf32> to vector<4x256xf32>
    %96 = arith.mulf %95, %89 : vector<4x256xf32>
    %c9 = arith.constant 9 : index
    %97 = memref.load %arg2[%c9] : memref<36xf32, #tpu.memory_space<smem>>
    %c27 = arith.constant 27 : index
    %98 = memref.load %arg2[%c27] : memref<36xf32, #tpu.memory_space<smem>>
    %99 = vector.broadcast %97 : f32 to vector<4x1xf32>
    %100 = vector.broadcast %98 : f32 to vector<4x1xf32>
    %101 = arith.select %19, %99, %100 : vector<4x1xi1>, vector<4x1xf32>
    %102 = vector.broadcast %101 : vector<4x1xf32> to vector<4x256xf32>
    %103 = arith.mulf %102, %25 : vector<4x256xf32>
    %c255_i32_6 = arith.constant 255 : i32
    %104 = tpu.dynamic_rotate %25 by %c255_i32_6 dim 1 : vector<4x256xf32>, i32 -> vector<4x256xf32>
    %c10 = arith.constant 10 : index
    %105 = memref.load %arg2[%c10] : memref<36xf32, #tpu.memory_space<smem>>
    %c28 = arith.constant 28 : index
    %106 = memref.load %arg2[%c28] : memref<36xf32, #tpu.memory_space<smem>>
    %107 = vector.broadcast %105 : f32 to vector<4x1xf32>
    %108 = vector.broadcast %106 : f32 to vector<4x1xf32>
    %109 = arith.select %19, %107, %108 : vector<4x1xi1>, vector<4x1xf32>
    %110 = vector.broadcast %109 : vector<4x1xf32> to vector<4x256xf32>
    %111 = arith.mulf %110, %104 : vector<4x256xf32>
    %c254_i32_7 = arith.constant 254 : i32
    %112 = tpu.dynamic_rotate %25 by %c254_i32_7 dim 1 : vector<4x256xf32>, i32 -> vector<4x256xf32>
    %c11 = arith.constant 11 : index
    %113 = memref.load %arg2[%c11] : memref<36xf32, #tpu.memory_space<smem>>
    %c29 = arith.constant 29 : index
    %114 = memref.load %arg2[%c29] : memref<36xf32, #tpu.memory_space<smem>>
    %115 = vector.broadcast %113 : f32 to vector<4x1xf32>
    %116 = vector.broadcast %114 : f32 to vector<4x1xf32>
    %117 = arith.select %19, %115, %116 : vector<4x1xi1>, vector<4x1xf32>
    %118 = vector.broadcast %117 : vector<4x1xf32> to vector<4x256xf32>
    %119 = arith.mulf %118, %112 : vector<4x256xf32>
    %c240_i32_8 = arith.constant 240 : i32
    %120 = tpu.dynamic_rotate %25 by %c240_i32_8 dim 1 : vector<4x256xf32>, i32 -> vector<4x256xf32>
    %c12 = arith.constant 12 : index
    %121 = memref.load %arg2[%c12] : memref<36xf32, #tpu.memory_space<smem>>
    %c30 = arith.constant 30 : index
    %122 = memref.load %arg2[%c30] : memref<36xf32, #tpu.memory_space<smem>>
    %123 = vector.broadcast %121 : f32 to vector<4x1xf32>
    %124 = vector.broadcast %122 : f32 to vector<4x1xf32>
    %125 = arith.select %19, %123, %124 : vector<4x1xi1>, vector<4x1xf32>
    %126 = vector.broadcast %125 : vector<4x1xf32> to vector<4x256xf32>
    %127 = arith.mulf %126, %120 : vector<4x256xf32>
    %c239_i32_9 = arith.constant 239 : i32
    %128 = tpu.dynamic_rotate %25 by %c239_i32_9 dim 1 : vector<4x256xf32>, i32 -> vector<4x256xf32>
    %c13 = arith.constant 13 : index
    %129 = memref.load %arg2[%c13] : memref<36xf32, #tpu.memory_space<smem>>
    %c31 = arith.constant 31 : index
    %130 = memref.load %arg2[%c31] : memref<36xf32, #tpu.memory_space<smem>>
    %131 = vector.broadcast %129 : f32 to vector<4x1xf32>
    %132 = vector.broadcast %130 : f32 to vector<4x1xf32>
    %133 = arith.select %19, %131, %132 : vector<4x1xi1>, vector<4x1xf32>
    %134 = vector.broadcast %133 : vector<4x1xf32> to vector<4x256xf32>
    %135 = arith.mulf %134, %128 : vector<4x256xf32>
    %c238_i32_10 = arith.constant 238 : i32
    %136 = tpu.dynamic_rotate %25 by %c238_i32_10 dim 1 : vector<4x256xf32>, i32 -> vector<4x256xf32>
    %c14 = arith.constant 14 : index
    %137 = memref.load %arg2[%c14] : memref<36xf32, #tpu.memory_space<smem>>
    %c32 = arith.constant 32 : index
    %138 = memref.load %arg2[%c32] : memref<36xf32, #tpu.memory_space<smem>>
    %139 = vector.broadcast %137 : f32 to vector<4x1xf32>
    %140 = vector.broadcast %138 : f32 to vector<4x1xf32>
    %141 = arith.select %19, %139, %140 : vector<4x1xi1>, vector<4x1xf32>
    %142 = vector.broadcast %141 : vector<4x1xf32> to vector<4x256xf32>
    %143 = arith.mulf %142, %136 : vector<4x256xf32>
    %c224_i32_11 = arith.constant 224 : i32
    %144 = tpu.dynamic_rotate %25 by %c224_i32_11 dim 1 : vector<4x256xf32>, i32 -> vector<4x256xf32>
    %c15 = arith.constant 15 : index
    %145 = memref.load %arg2[%c15] : memref<36xf32, #tpu.memory_space<smem>>
    %c33 = arith.constant 33 : index
    %146 = memref.load %arg2[%c33] : memref<36xf32, #tpu.memory_space<smem>>
    %147 = vector.broadcast %145 : f32 to vector<4x1xf32>
    %148 = vector.broadcast %146 : f32 to vector<4x1xf32>
    %149 = arith.select %19, %147, %148 : vector<4x1xi1>, vector<4x1xf32>
    %150 = vector.broadcast %149 : vector<4x1xf32> to vector<4x256xf32>
    %151 = arith.mulf %150, %144 : vector<4x256xf32>
    %c223_i32_12 = arith.constant 223 : i32
    %152 = tpu.dynamic_rotate %25 by %c223_i32_12 dim 1 : vector<4x256xf32>, i32 -> vector<4x256xf32>
    %c16 = arith.constant 16 : index
    %153 = memref.load %arg2[%c16] : memref<36xf32, #tpu.memory_space<smem>>
    %c34 = arith.constant 34 : index
    %154 = memref.load %arg2[%c34] : memref<36xf32, #tpu.memory_space<smem>>
    %155 = vector.broadcast %153 : f32 to vector<4x1xf32>
    %156 = vector.broadcast %154 : f32 to vector<4x1xf32>
    %157 = arith.select %19, %155, %156 : vector<4x1xi1>, vector<4x1xf32>
    %158 = vector.broadcast %157 : vector<4x1xf32> to vector<4x256xf32>
    %159 = arith.mulf %158, %152 : vector<4x256xf32>
    %c222_i32_13 = arith.constant 222 : i32
    %160 = tpu.dynamic_rotate %25 by %c222_i32_13 dim 1 : vector<4x256xf32>, i32 -> vector<4x256xf32>
    %c17 = arith.constant 17 : index
    %161 = memref.load %arg2[%c17] : memref<36xf32, #tpu.memory_space<smem>>
    %c35 = arith.constant 35 : index
    %162 = memref.load %arg2[%c35] : memref<36xf32, #tpu.memory_space<smem>>
    %163 = vector.broadcast %161 : f32 to vector<4x1xf32>
    %164 = vector.broadcast %162 : f32 to vector<4x1xf32>
    %165 = arith.select %19, %163, %164 : vector<4x1xi1>, vector<4x1xf32>
    %166 = vector.broadcast %165 : vector<4x1xf32> to vector<4x256xf32>
    %167 = arith.mulf %166, %160 : vector<4x256xf32>
    %168 = arith.addf %32, %40 : vector<4x256xf32>
    %169 = arith.addf %48, %56 : vector<4x256xf32>
    %170 = arith.addf %64, %72 : vector<4x256xf32>
    %171 = arith.addf %80, %88 : vector<4x256xf32>
    %172 = arith.addf %96, %103 : vector<4x256xf32>
    %173 = arith.addf %111, %119 : vector<4x256xf32>
    %174 = arith.addf %127, %135 : vector<4x256xf32>
    %175 = arith.addf %143, %151 : vector<4x256xf32>
    %176 = arith.addf %159, %167 : vector<4x256xf32>
    %177 = arith.addf %168, %169 : vector<4x256xf32>
    %178 = arith.addf %170, %171 : vector<4x256xf32>
    %179 = arith.addf %172, %173 : vector<4x256xf32>
    %180 = arith.addf %174, %175 : vector<4x256xf32>
    %181 = arith.addf %177, %178 : vector<4x256xf32>
    %182 = arith.addf %179, %180 : vector<4x256xf32>
    %183 = arith.addf %181, %182 : vector<4x256xf32>
    %184 = arith.addf %183, %176 : vector<4x256xf32>
    %c0_14 = arith.constant 0 : index
    %185 = memref.load %arg3[%c0_14] : memref<2xf32, #tpu.memory_space<smem>>
    %c1_15 = arith.constant 1 : index
    %186 = memref.load %arg3[%c1_15] : memref<2xf32, #tpu.memory_space<smem>>
    %187 = vector.broadcast %185 : f32 to vector<4x1xf32>
    %188 = vector.broadcast %186 : f32 to vector<4x1xf32>
    %189 = arith.select %19, %187, %188 : vector<4x1xi1>, vector<4x1xf32>
    %190 = vector.broadcast %189 : vector<4x1xf32> to vector<4x256xf32>
    %191 = arith.addf %184, %190 : vector<4x256xf32>
    %c0_16 = arith.constant 0 : index
    %c0_17 = arith.constant 0 : index
    %192 = vector.load %arg4[%c0_16, %c0_17] : memref<4x256xf32, #tpu.memory_space<vmem>>, vector<4x256xf32>
    tpu.vector_store %arg4[%c0_16, %c0_17], %191 {strides = array<i32>} : memref<4x256xf32, #tpu.memory_space<vmem>>, vector<4x256xf32>,
    return
  }
  func.func @transform_0(%arg0: i32) -> (i32, i32) {
    %c0_i32 = arith.constant 0 : i32
    %c0_i32_0 = arith.constant 0 : i32
    %c0_i32_1 = arith.constant 0 : i32
    return %c0_i32, %c0_i32_0 : i32, i32
  }
  func.func @transform_1(%arg0: i32) -> i32 {
    %c0_i32 = arith.constant 0 : i32
    %c0_i32_0 = arith.constant 0 : i32
    return %c0_i32 : i32
  }
  func.func @transform_2(%arg0: i32) -> i32 {
    %c0_i32 = arith.constant 0 : i32
    %c0_i32_0 = arith.constant 0 : i32
    return %c0_i32 : i32
  }
  func.func @transform_3(%arg0: i32) -> (i32, i32) {
    %c0_i32 = arith.constant 0 : i32
    %c0_i32_0 = arith.constant 0 : i32
    %c0_i32_1 = arith.constant 0 : i32
    return %c0_i32, %c0_i32_0 : i32, i32
  }
}

</mosaic_0001>

<bundles_post_ra>
// kernel: tpu_custom_call.1
= control target key start
LH: loop header
LB: loop body
LE: loop exit
PB: predicated region body
PF: predicated region fallthrough
CT: control target
= control target key end

     0   :  { %8 = vsyncpa [#allocation3], 0  ;;  %s816_s0 = inlined_call_operand.hbm [shape: f32[4,256], index: 0, kind: input, shape index: {}]   ;;  %s817_s1 = inlined_call_operand.vmem [shape: f32[36], index: 1, kind: input, shape index: {}]   ;;  %s818_s2 = inlined_call_operand.vmem [shape: f32[2], index: 2, kind: input, shape index: {}]   ;;  %s819_s3 = inlined_call_operand.hbm [shape: f32[4,256], index: 3, kind: output, shape index: {}]  }
   0x1   :  { %9 = vsyncpa [#allocation5], 0 }
   0x2   :  { %10 = vsyncpa [#allocation8], 0 }
   0x3   :  { %11 = vsyncpa [#allocation4], 0  ;;  %s28_s14 = sshll.u32 %s817_s1, 4  ;;  %s534_s15 = smov [#allocation2]   ;;  %s29_s14 = int_to_ptr.vmem [resolvable:$true] %s28_s14 }
   0x4   :  { %s18_s16 = sshll.u32 %s534_s15, 4  ;;  %s19_s16 = int_to_ptr.vmem [resolvable:$true] %s18_s16 }
   0x5   :  { %s470_s17 = scalar_lea.vmem %s19_s16, 128  ;;  %p475_p1 = scmp.lt.s32.totalorder %s19_s16, %s19_s16 }
   0x6   :  { %p471_p0 = scmp.ne.s32.totalorder %s19_s16, %s470_s17  ;;  %p476_p2 = scmp.lt.s32.totalorder %s470_s17, %s470_s17 }
   0x8   :  { %p477_p3 = por %p476_p2, %p475_p1 }
   0xa   :  { %p478_p4 = pnand %p477_p3, %p471_p0 }
   0xc   :  { %481 = shalt.err (!%p478_p4)
}
   0xd   :  { %21 = dma.hbm_to_vmem [thread:$0]  %s816_s0, 128, %s19_s16, [#allocation3]  }
   0xe   :  { %s482_s20 = scalar_lea.vmem %s29_s14, 16  ;;  %p487_p6 = scmp.lt.s32.totalorder %s29_s14, %s29_s14 }
   0xf   :  { %p483_p5 = scmp.ne.s32.totalorder %s29_s14, %s482_s20  ;;  %p488_p7 = scmp.lt.s32.totalorder %s482_s20, %s482_s20 }
  0x11   :  { %p489_p8 = por %p488_p7, %p487_p6 }
  0x13   :  { %p490_p9 = pnand %p489_p8, %p483_p5 }
  0x15   :  { %493 = shalt.err (!%p490_p9)
}
  0x16   :  { %s535_s1 = smov [#allocation6]   ;;  %s38_s23 = sshll.u32 %s818_s2, 4  ;;  %s39_s23 = int_to_ptr.vmem [resolvable:$true] %s38_s23 }
  0x17   :  { %31 = dma.vmem_to_smem %s29_s14, 16, %s535_s1, [#allocation5]  }
  0x18   :  { %s494_s24 = scalar_lea.vmem %s39_s23, 16  ;;  %p499_p11 = scmp.lt.s32.totalorder %s39_s23, %s39_s23 }
  0x19   :  { %p495_p10 = scmp.ne.s32.totalorder %s39_s23, %s494_s24  ;;  %p500_p12 = scmp.lt.s32.totalorder %s494_s24, %s494_s24 }
  0x1b   :  { %p501_p13 = por %p500_p12, %p499_p11 }
  0x1d   :  { %p502_p0 = pnand %p501_p13, %p495_p10 }
  0x1f   :  { %505 = shalt.err (!%p502_p0)
}
  0x20   :  { %s536_s0 = smov [#allocation7]  }
  0x21   :  { %41 = dma.vmem_to_smem %s39_s23, 16, %s536_s0, [#allocation8]  }
  0x22   :  { %526 = dma.done.wait [#allocation3], 128  }
  0x23   :  { %527 = vsyncadd [#allocation3], 4294967168 }
  0x24   :  { %528 = dma.done.wait [#allocation5], 16  }
  0x25   :  { %529 = vsyncadd [#allocation5], 4294967280 }
  0x26   :  { %530 = dma.done.wait [#allocation8], 16  }
  0x27   :  { %531 = vsyncadd [#allocation8], 4294967280 }
  0x28   :  { %51 = sfence }
  0x29   :  { %v53_v0 = vlaneseq  ;;  %v52_v2 = vld [vmem:[#allocation2] sm:$0xff]  ;;  %vm89_vm0 = vcmask 1041408   ;;  %vm92_vm1 = vcmask 1042432   ;;  %s119_s2 = sld [smem:[#allocation6]]  ;;  %s537_s26 = smov 126  }
  0x2a   :  { %s414_s25 = sld [smem:[#allocation6 + $0x12]]  ;;  %s538_s27 = smov 127  }
  0x2b   :  { %v54_v1 = vshrl.u32 %v53_v0, 7  ;;  %s539_s28 = smov 112   ;;  %s540_s29 = smov 111   ;;  %v617_v39 = vand.u32 127, %v53_v0 }
  0x2c   :  { %s431_s30 = sld [smem:[#allocation6 + $0x9]]  ;;  %s541_s5 = smov 110  }
  0x2d   :  { %v71_v3 = vsub.s32 0, %v54_v1  ;;  %v81_v4 = vsub.s32 2, %v54_v1  ;;  %v75_v5 = vsub.s32 4, %v54_v1  ;;  %v85_v6 = vsub.s32 6, %v54_v1  ;;  %s432_s4 = sld [smem:[#allocation6 + $0x1b]]  ;;  %s542_s6 = smov 96  }
  0x2e   :  { %v59_v13 = vand.u32 1, %v54_v1  ;;  %v101_v22 = vsub.s32 5, %v54_v1  ;;  %v111_v23 = vsub.s32 7, %v54_v1  ;;  %v97_v24 = vsub.s32 1, %v54_v1  ;;  %s543_s7 = smov 95   ;;  %s544_s8 = smov 94  }
  0x2f   :  { %v72_v7 = vrot.slane %v52_v2, %v71_v3  ;;  %v82_v8 = vrot.slane %v52_v2, %v81_v4  ;;  %v76_v9 = vrot.slane %v52_v2, %v75_v5  ;;  %v86_v10 = vrot.slane %v52_v2, %v85_v6  ;;  %s417_s9 = sld [smem:[#allocation6 + $0x2]] }
  0x30   :  { %vm582_vm2 = vcmp.eq.s32.totalorder %v59_v13, 0  ;;  %v121_v17 = vstv %s119_s2  ;;  %v122_v18 = vstv %s414_s25  ;;  %v107_v25 = vsub.s32 3, %v54_v1  ;;  %s418_s10 = sld [smem:[#allocation6 + $0x14]] }
  0x31   :  { %v90_v11 = vsel %vm89_vm0, %v72_v7, %v82_v8  ;;  %v91_v12 = vsel %vm89_vm0, %v76_v9, %v86_v10  ;;  %v123_v19 = vsel %vm582_vm2, %v121_v17, %v122_v18  ;;  %v102_v26 = vrot.slane %v52_v2, %v101_v22  ;;  %s415_s11 = sld [smem:[#allocation6 + $0x1]] }
  0x32   :  { %v93_v14 = vsel %vm92_vm1, %v90_v11, %v82_v8  ;;  %v94_v15 = vsel %vm92_vm1, %v91_v12, %v86_v10  ;;  %v112_v27 = vrot.slane %v52_v2, %v111_v23  ;;  %v98_v28 = vrot.slane %v52_v2, %v97_v24  ;;  %s416_s12 = sld [smem:[#allocation6 + $0x13]] }
  0x33   :  { %142 = vrot.lane.b32.xlu1 %v93_v14, %s537_s26  ;;  %126 = vrot.lane.b32.xlu0 %v93_v14, %s538_s27  ;;  %v590_v20 = vmul.f32 %v123_v19, %v94_v15  ;;  %v592_v21 = vmul.f32 %v123_v19, %v93_v14  ;;  %v108_v29 = vrot.slane %v52_v2, %v107_v25  ;;  %v242_v32 = vstv %s431_s30  ;;  %s419_s13 = sld [smem:[#allocation6 + $0x3]] }
  0x34   :  { %v116_v30 = vsel %vm89_vm0, %v102_v26, %v112_v27  ;;  %v243_v33 = vstv %s432_s4  ;;  %s420_s14 = sld [smem:[#allocation6 + $0x15]]  ;;  %vm146_vm3 = vcmp.lt.s32.totalorder %v617_v39, 126  ;;  %vm132_vm4 = vcmp.lt.s32.totalorder %v617_v39, 127 }
  0x35   :  { %v115_v31 = vsel %vm89_vm0, %v98_v28, %v108_v29  ;;  %v118_v34 = vsel %vm92_vm1, %v116_v30, %v112_v27  ;;  %v244_v36 = vsel %vm582_vm2, %v242_v32, %v243_v33  ;;  %s619_s15 = sld [smem:[#allocation6 + $0x4]]  ;;  %v151_v42 = vstv %s417_s9 }
  0x36   :  { %v117_v35 = vsel %vm92_vm1, %v115_v31, %v108_v29  ;;  %v606_v38 = vmul.f32 %v244_v36, %v118_v34  ;;  %v152_v43 = vstv %s418_s10  ;;  %s621_s16 = sld [smem:[#allocation6 + $0x16]]  ;;  %vm160_vm5 = vcmp.lt.s32.totalorder %v617_v39, 112 }
  0x37   :  { %144 = vrot.lane.b32.xlu1 %v94_v15, %s537_s26  ;;  %128 = vrot.lane.b32.xlu0 %v94_v15, %s538_s27  ;;  %v604_v37 = vmul.f32 %v244_v36, %v117_v35  ;;  %v137_v44 = vstv %s415_s11  ;;  %v153_v46 = vsel %vm582_vm2, %v151_v42, %v152_v43  ;;  %s629_s17 = sld [smem:[#allocation6 + $0x5]]  ;;  %vm174_vm6 = vcmp.lt.s32.totalorder %v617_v39, 111 }
  0x38   :  { %v138_v45 = vstv %s416_s12  ;;  %s632_s18 = sld [smem:[#allocation6 + $0x17]]  ;;  %vm188_vm7 = vcmp.lt.s32.totalorder %v617_v39, 110  ;;  %vm202_vm8 = vcmp.lt.s32.totalorder %v617_v39, 96  ;;  %vm216_vm9 = vcmp.lt.s32.totalorder %v617_v39, 95 }
  0x39   :  { %v139_v47 = vsel %vm582_vm2, %v137_v44, %v138_v45  ;;  %v165_v50 = vstv %s419_s13  ;;  %s644_s19 = sld [smem:[#allocation6 + $0x6]]  ;;  %vm230_vm10 = vcmp.lt.s32.totalorder %v617_v39, 94  ;;  %s545_s13 = smov [#allocation9]  }
  0x3a   :  { %v166_v51 = vstv %s420_s14  ;;  %s650_s20 = sld [smem:[#allocation6 + $0x18]]  ;;  %s403_s14 = sshll.u32 %s545_s13, 4  ;;  %s404_s14 = int_to_ptr.vmem [resolvable:$true] %s403_s14 }
  0x3b   :  { %158 = vrot.lane.b32.xlu1 %v94_v15, %s539_s28  ;;  %156 = vrot.lane.b32.xlu0 %v93_v14, %s539_s28  ;;  %v167_v60 = vsel %vm582_vm2, %v165_v50, %v166_v51  ;;  %v179_v1 = vstv %s619_s15  ;;  %s659_s1 = sld [smem:[#allocation6 + $0x7]]  ;;  %s506_s15 = scalar_lea.vmem %s404_s14, 128 }
  0x3c   :  { %v180_v2 = vstv %s621_s16  ;;  %s663_s21 = sld [smem:[#allocation6 + $0x19]]  ;;  %p507_p1 = scmp.ne.s32.totalorder %s404_s14, %s506_s15 }
  0x3d   :  { %v181_v7 = vsel %vm582_vm2, %v179_v1, %v180_v2  ;;  %v193_v12 = vstv %s629_s17  ;;  %s672_s22 = sld [smem:[#allocation6 + $0x8]]  ;;  %p511_p2 = scmp.lt.s32.totalorder %s404_s14, %s404_s14 }
  0x3e   :  { %v194_v13 = vstv %s632_s18  ;;  %s676_s23 = sld [smem:[#allocation6 + $0x1a]]  ;;  %p512_p3 = scmp.lt.s32.totalorder %s506_s15, %s506_s15 }
  0x3f   :  { %172 = vrot.lane.b32.xlu1 %v94_v15, %s540_s29  ;;  %170 = vrot.lane.b32.xlu0 %v93_v14, %s540_s29  ;;  %v207_v24 = vstv %s644_s19  ;;  %s685_s24 = sld [smem:[#allocation6 + $0xa]] }
  0x40   :  { %v208_v25 = vstv %s650_s20  ;;  %s689_s0 = sld [smem:[#allocation6 + $0x1c]]  ;;  %p513_p4 = por %p512_p3, %p511_p2 }
  0x41   :  { %v209_v30 = vsel %vm582_vm2, %v207_v24, %v208_v25  ;;  %s696_s2 = sld [smem:[#allocation6 + $0xb]] }
  0x42   :  { %v222_v36 = vstv %s663_s21  ;;  %s700_s25 = sld [smem:[#allocation6 + $0x1d]]  ;;  %p514_p5 = pnand %p513_p4, %p507_p1 }
  0x43   :  { %186 = vrot.lane.b32.xlu1 %v94_v15, %s541_s5  ;;  %184 = vrot.lane.b32.xlu0 %v93_v14, %s541_s5  ;;  %s741_s30 = sld [smem:[#allocation6 + $0xe]] }
  0x44   :  { %s745_s4 = sld [smem:[#allocation6 + $0x20]] }
  0x45   :  { %s775_s9 = sld [smem:[#allocation6 + $0x11]] }
  0x46   :  { %s448_s10 = sld [smem:[#allocation6 + $0x23]] }
  0x47   :  { %200 = vrot.lane.b32.xlu1 %v94_v15, %s542_s6  ;;  %198 = vrot.lane.b32.xlu0 %v93_v14, %s542_s6  ;;  %s786_s11 = sld [smem:[#allocation7]] }
  0x48   :  { %s792_s12 = sld [smem:[#allocation7 + $0x1]] }
  0x4b   :  { %214 = vrot.lane.b32.xlu1 %v94_v15, %s543_s7  ;;  %212 = vrot.lane.b32.xlu0 %v93_v14, %s543_s7 }
  0x4f   :  { %228 = vrot.lane.b32.xlu1 %v94_v15, %s544_s8  ;;  %226 = vrot.lane.b32.xlu0 %v93_v14, %s544_s8 }
  0x53   :  { %249 = vrot.lane.b32.xlu1 %v118_v34, %s538_s27  ;;  %247 = vrot.lane.b32.xlu0 %v117_v35, %s538_s27  ;;  %s715_s27 = sld [smem:[#allocation6 + $0x1e]] }
  0x57   :  { %262 = vrot.lane.b32.xlu1 %v118_v34, %s537_s26  ;;  %260 = vrot.lane.b32.xlu0 %v117_v35, %s537_s26  ;;  %s711_s26 = sld [smem:[#allocation6 + $0xc]] }
  0x5b   :  { %275 = vrot.lane.b32.xlu1 %v118_v34, %s539_s28  ;;  %273 = vrot.lane.b32.xlu0 %v117_v35, %s539_s28  ;;  %s725_s28 = sld [smem:[#allocation6 + $0xd]] }
  0x5f   :  { %288 = vrot.lane.b32.xlu1 %v118_v34, %s540_s29  ;;  %286 = vrot.lane.b32.xlu0 %v117_v35, %s540_s29  ;;  %s733_s29 = sld [smem:[#allocation6 + $0x1f]] }
  0x63   :  { %301 = vrot.lane.b32.xlu1 %v118_v34, %s541_s5  ;;  %299 = vrot.lane.b32.xlu0 %v117_v35, %s541_s5  ;;  %s753_s5 = sld [smem:[#allocation6 + $0xf]] }
  0x67   :  { %314 = vrot.lane.b32.xlu1 %v118_v34, %s542_s6  ;;  %312 = vrot.lane.b32.xlu0 %v117_v35, %s542_s6  ;;  %s757_s6 = sld [smem:[#allocation6 + $0x21]] }
  0x6b   :  { %327 = vrot.lane.b32.xlu1 %v118_v34, %s543_s7  ;;  %325 = vrot.lane.b32.xlu0 %v117_v35, %s543_s7  ;;  %s765_s7 = sld [smem:[#allocation6 + $0x10]] }
  0x6f   :  { %340 = vrot.lane.b32.xlu1 %v118_v34, %s544_s8  ;;  %338 = vrot.lane.b32.xlu0 %v117_v35, %s544_s8  ;;  %v221_v35 = vstv %s659_s1  ;;  %s446_s8 = sld [smem:[#allocation6 + $0x22]] }
  0x70   :  { %v223_v44 = vsel %vm582_vm2, %v221_v35, %v222_v36 }
  0xa5   :  { %v143_v40 = vpop.permute.xlu1 %142  ;;  %v127_v41 = vpop.permute.xlu0 %126 }
  0xa9   :  { %v145_v48 = vpop.permute.xlu1 %144  ;;  %v129_v49 = vpop.permute.xlu0 %128 }
  0xaa   :  { %v147_v52 = vsel %vm146_vm3, %v143_v40, %v145_v48  ;;  %v148_v53 = vsel %vm146_vm3, %v145_v48, %v143_v40  ;;  %v133_v54 = vsel %vm132_vm4, %v127_v41, %v129_v49  ;;  %v134_v55 = vsel %vm132_vm4, %v129_v49, %v127_v41 }
  0xab   :  { %v154_v56 = vmul.f32 %v153_v46, %v147_v52  ;;  %v155_v57 = vmul.f32 %v153_v46, %v148_v53  ;;  %v140_v58 = vmul.f32 %v139_v47, %v133_v54  ;;  %v141_v59 = vmul.f32 %v139_v47, %v134_v55 }
  0xac   :  { %v235_v47 = vstv %s672_s22  ;;  %v236_v48 = vstv %s676_s23 }
  0xad   :  { %v351_v61 = vadd.f32 %v140_v58, %v592_v21  ;;  %v352_v62 = vadd.f32 %v141_v59, %v590_v20  ;;  %v159_v63 = vpop.permute.xlu1 %158  ;;  %v157_v0 = vpop.permute.xlu0 %156  ;;  %v195_v21 = vsel %vm582_vm2, %v193_v12, %v194_v13  ;;  %v237_v53 = vsel %vm582_vm2, %v235_v47, %v236_v48 }
  0xae   :  { %v161_v3 = vsel %vm160_vm5, %v157_v0, %v159_v63  ;;  %v162_v4 = vsel %vm160_vm5, %v159_v63, %v157_v0  ;;  %v255_v58 = vstv %s685_s24  ;;  %v256_v59 = vstv %s689_s0 }
  0xaf   :  { %v168_v5 = vmul.f32 %v167_v60, %v161_v3  ;;  %v169_v6 = vmul.f32 %v167_v60, %v162_v4  ;;  %v257_v2 = vsel %vm582_vm2, %v255_v58, %v256_v59  ;;  %v268_v3 = vstv %s696_s2 }
  0xb0   :  { %v269_v4 = vstv %s700_s25 }
  0xb1   :  { %v353_v8 = vadd.f32 %v168_v5, %v154_v56  ;;  %v354_v9 = vadd.f32 %v169_v6, %v155_v57  ;;  %v173_v10 = vpop.permute.xlu1 %172  ;;  %v171_v11 = vpop.permute.xlu0 %170 }
  0xb2   :  { %v175_v14 = vsel %vm174_vm6, %v171_v11, %v173_v10  ;;  %v176_v15 = vsel %vm174_vm6, %v173_v10, %v171_v11 }
  0xb3   :  { %v369_v17 = vadd.f32 %v353_v8, %v351_v61  ;;  %v370_v18 = vadd.f32 %v354_v9, %v352_v62  ;;  %v182_v19 = vmul.f32 %v181_v7, %v175_v14  ;;  %v183_v20 = vmul.f32 %v181_v7, %v176_v15 }
  0xb4   :  { %v270_v15 = vsel %vm582_vm2, %v268_v3, %v269_v4 }
  0xb5   :  { %v187_v22 = vpop.permute.xlu1 %186  ;;  %v185_v23 = vpop.permute.xlu0 %184 }
  0xb6   :  { %v189_v26 = vsel %vm188_vm7, %v185_v23, %v187_v22  ;;  %v190_v27 = vsel %vm188_vm7, %v187_v22, %v185_v23 }
  0xb7   :  { %v196_v28 = vmul.f32 %v195_v21, %v189_v26  ;;  %v197_v29 = vmul.f32 %v195_v21, %v190_v27 }
  0xb9   :  { %v355_v31 = vadd.f32 %v196_v28, %v182_v19  ;;  %v356_v32 = vadd.f32 %v197_v29, %v183_v20  ;;  %v201_v33 = vpop.permute.xlu1 %200  ;;  %v199_v34 = vpop.permute.xlu0 %198  ;;  %v294_v28 = vstv %s725_s28  ;;  %v295_v29 = vstv %s733_s29 }
  0xba   :  { %v203_v40 = vsel %vm202_vm8, %v199_v34, %v201_v33  ;;  %v204_v41 = vsel %vm202_vm8, %v201_v33, %v199_v34  ;;  %v296_v36 = vsel %vm582_vm2, %v294_v28, %v295_v29 }
  0xbb   :  { %v210_v42 = vmul.f32 %v209_v30, %v203_v40  ;;  %v211_v43 = vmul.f32 %v209_v30, %v204_v41 }
  0xbd   :  { %v215_v45 = vpop.permute.xlu1 %214  ;;  %v213_v46 = vpop.permute.xlu0 %212 }
  0xbe   :  { %v217_v49 = vsel %vm216_vm9, %v213_v46, %v215_v45  ;;  %v218_v50 = vsel %vm216_vm9, %v215_v45, %v213_v46 }
  0xbf   :  { %v224_v51 = vmul.f32 %v223_v44, %v217_v49  ;;  %v225_v52 = vmul.f32 %v223_v44, %v218_v50 }
  0xc1   :  { %v357_v54 = vadd.f32 %v224_v51, %v210_v42  ;;  %v358_v55 = vadd.f32 %v225_v52, %v211_v43  ;;  %v229_v56 = vpop.permute.xlu1 %228  ;;  %v227_v57 = vpop.permute.xlu0 %226  ;;  %v307_v42 = vstv %s741_s30  ;;  %v308_v43 = vstv %s745_s4 }
  0xc2   :  { %v231_v60 = vsel %vm230_vm10, %v227_v57, %v229_v56  ;;  %v232_v61 = vsel %vm230_vm10, %v229_v56, %v227_v57  ;;  %v309_v48 = vsel %vm582_vm2, %v307_v42, %v308_v43 }
  0xc3   :  { %v371_v62 = vadd.f32 %v357_v54, %v355_v31  ;;  %v372_v63 = vadd.f32 %v358_v55, %v356_v32  ;;  %v238_v0 = vmul.f32 %v237_v53, %v231_v60  ;;  %v239_v1 = vmul.f32 %v237_v53, %v232_v61 }
  0xc4   :  { %v320_v53 = vstv %s753_s5  ;;  %v321_v54 = vstv %s757_s6 }
  0xc5   :  { %v727_v5 = vadd.f32 %v371_v62, %v369_v17  ;;  %v729_v6 = vadd.f32 %v372_v63, %v370_v18  ;;  %v359_v7 = vadd.f32 %v604_v37, %v238_v0  ;;  %v360_v8 = vadd.f32 %v606_v38, %v239_v1  ;;  %v250_v9 = vpop.permute.xlu1 %249  ;;  %v248_v10 = vpop.permute.xlu0 %247 }
  0xc6   :  { %v251_v11 = vsel %vm132_vm4, %v248_v10, %v250_v9  ;;  %v252_v12 = vsel %vm132_vm4, %v250_v9, %v248_v10  ;;  %v281_v17 = vstv %s711_s26  ;;  %v282_v18 = vstv %s715_s27 }
  0xc7   :  { %v258_v13 = vmul.f32 %v257_v2, %v251_v11  ;;  %v259_v14 = vmul.f32 %v257_v2, %v252_v12  ;;  %v283_v23 = vsel %vm582_vm2, %v281_v17, %v282_v18  ;;  %v322_v59 = vsel %vm582_vm2, %v320_v53, %v321_v54 }
  0xc8   :  { %v333_v62 = vstv %s765_s7  ;;  %v334_v63 = vstv %s446_s8  ;;  %v346_v11 = vstv %s775_s9  ;;  %v347_v12 = vstv %s448_s10 }
  0xc9   :  { %v263_v37 = vpop.permute.xlu1 %262  ;;  %v261_v38 = vpop.permute.xlu0 %260  ;;  %v335_v4 = vsel %vm582_vm2, %v333_v62, %v334_v63  ;;  %v348_v18 = vsel %vm582_vm2, %v346_v11, %v347_v12 }
  0xca   :  { %v264_v19 = vsel %vm146_vm3, %v261_v38, %v263_v37  ;;  %v265_v20 = vsel %vm146_vm3, %v263_v37, %v261_v38 }
  0xcb   :  { %v271_v21 = vmul.f32 %v270_v15, %v264_v19  ;;  %v272_v22 = vmul.f32 %v270_v15, %v265_v20 }
  0xcd   :  { %v361_v24 = vadd.f32 %v271_v21, %v258_v13  ;;  %v362_v25 = vadd.f32 %v272_v22, %v259_v14  ;;  %v276_v26 = vpop.permute.xlu1 %275  ;;  %v274_v27 = vpop.permute.xlu0 %273 }
  0xce   :  { %v277_v30 = vsel %vm160_vm5, %v274_v27, %v276_v26  ;;  %v278_v31 = vsel %vm160_vm5, %v276_v26, %v274_v27  ;;  %v388_v26 = vstv %s792_s12 }
  0xcf   :  { %v373_v32 = vadd.f32 %v361_v24, %v359_v7  ;;  %v374_v33 = vadd.f32 %v362_v25, %v360_v8  ;;  %v284_v34 = vmul.f32 %v283_v23, %v277_v30  ;;  %v285_v35 = vmul.f32 %v283_v23, %v278_v31 }
  0xd0   :  { %v387_v25 = vstv %s786_s11 }
  0xd1   :  { %v289_v40 = vpop.permute.xlu1 %288  ;;  %v287_v41 = vpop.permute.xlu0 %286 }
  0xd2   :  { %v290_v44 = vsel %vm174_vm6, %v287_v41, %v289_v40  ;;  %v291_v45 = vsel %vm174_vm6, %v289_v40, %v287_v41 }
  0xd3   :  { %v297_v46 = vmul.f32 %v296_v36, %v290_v44  ;;  %v298_v47 = vmul.f32 %v296_v36, %v291_v45 }
  0xd5   :  { %v363_v49 = vadd.f32 %v297_v46, %v284_v34  ;;  %v364_v50 = vadd.f32 %v298_v47, %v285_v35  ;;  %v302_v51 = vpop.permute.xlu1 %301  ;;  %v300_v52 = vpop.permute.xlu0 %299 }
  0xd6   :  { %v303_v55 = vsel %vm188_vm7, %v300_v52, %v302_v51  ;;  %v304_v56 = vsel %vm188_vm7, %v302_v51, %v300_v52 }
  0xd7   :  { %v310_v57 = vmul.f32 %v309_v48, %v303_v55  ;;  %v311_v58 = vmul.f32 %v309_v48, %v304_v56 }
  0xd9   :  { %v315_v60 = vpop.permute.xlu1 %314  ;;  %v313_v61 = vpop.permute.xlu0 %312 }
  0xda   :  { %v316_v0 = vsel %vm202_vm8, %v313_v61, %v315_v60  ;;  %v317_v1 = vsel %vm202_vm8, %v315_v60, %v313_v61 }
  0xdb   :  { %v323_v2 = vmul.f32 %v322_v59, %v316_v0  ;;  %v324_v3 = vmul.f32 %v322_v59, %v317_v1 }
  0xdd   :  { %v365_v7 = vadd.f32 %v323_v2, %v310_v57  ;;  %v366_v8 = vadd.f32 %v324_v3, %v311_v58  ;;  %v328_v9 = vpop.permute.xlu1 %327  ;;  %v326_v10 = vpop.permute.xlu0 %325 }
  0xde   :  { %v329_v13 = vsel %vm216_vm9, %v326_v10, %v328_v9  ;;  %v330_v14 = vsel %vm216_vm9, %v328_v9, %v326_v10 }
  0xdf   :  { %v375_v15 = vadd.f32 %v365_v7, %v363_v49  ;;  %v376_v37 = vadd.f32 %v366_v8, %v364_v50  ;;  %v336_v38 = vmul.f32 %v335_v4, %v329_v13  ;;  %v337_v17 = vmul.f32 %v335_v4, %v330_v14 }
  0xe1   :  { %v379_v19 = vadd.f32 %v375_v15, %v373_v32  ;;  %v380_v20 = vadd.f32 %v376_v37, %v374_v33  ;;  %v341_v21 = vpop.permute.xlu1 %340  ;;  %v339_v22 = vpop.permute.xlu0 %338  ;;  %v389_v32 = vsel %vm582_vm2, %v387_v25, %v388_v26 }
  0xe2   :  { %v342_v23 = vsel %vm230_vm10, %v339_v22, %v341_v21  ;;  %v343_v24 = vsel %vm230_vm10, %v341_v21, %v339_v22 }
  0xe3   :  { %v349_v27 = vmul.f32 %v348_v18, %v342_v23  ;;  %v350_v28 = vmul.f32 %v348_v18, %v343_v24  ;;  %v381_v29 = vadd.f32 %v379_v19, %v727_v5  ;;  %v382_v30 = vadd.f32 %v380_v20, %v729_v6 }
  0xe5   :  { %v367_v31 = vadd.f32 %v349_v27, %v336_v38  ;;  %v368_v34 = vadd.f32 %v350_v28, %v337_v17 }
  0xe7   :  { %v383_v33 = vadd.f32 %v381_v29, %v367_v31  ;;  %v384_v35 = vadd.f32 %v382_v30, %v368_v34 }
  0xe9   :  { %v390_v36 = vadd.f32 %v389_v32, %v383_v33  ;;  %v391_v39 = vadd.f32 %v389_v32, %v384_v35 }
  0xeb   :  { %v394_v40 = vcombine.low %v390_v36, %v391_v39 }
  0xed   :  { %396 = vst [vmem:[#allocation9] sm:$0xff] %v394_v40 }
  0xee   :  { %517 = shalt.err (!%p514_p5)
}
  0xef   :  { %406 = dma.vmem_to_hbm [thread:$0]  %s404_s14, 128, %s819_s3, [#allocation4]  }
  0xf0   :  { %532 = dma.done.wait [#allocation4], 128  }
  0xf1   :  { %533 = vsyncadd [#allocation4], 4294967168 }
  0xf2   :  { %410 = vsyncpa [#allocation3], 1 }
  0xf3   :  { %411 = vsyncpa [#allocation4], 1 }
  0xf4   :  { %412 = vsyncpa [#allocation5], 1 }
  0xf5   :  { %413 = vsyncpa [#allocation8], 1 }

</bundles_post_ra>
